<compile_context>
chip_gen: v7x
topology: tpu7x:2x2x1
jax: 0.10.0
libtpu: 0.0.40
codegen_flags: <defaults>
</compile_context>

<pallas_src>
import functools

import jax
import jax.numpy as jnp
from jax.experimental import pallas as pl
from jax.experimental.pallas import tpu as pltpu


def _gcnn_kernel(hidden,
                 a_ref, x_ref, w1_ref, w2_ref, wl1_ref, slab_ref, mb_ref,
                 out_ref):
    f32 = jnp.float32
    H = hidden

    a = a_ref[...]                                   # [N, N] weighted adjacency
    x = x_ref[...]                                   # [N, F]

    # Static slices of the packed parameter slab (views, zero runtime cost).
    b1 = slab_ref[0:1, 0:H]                          # [1, H]  folded conv1 bias
    b2 = slab_ref[1:2, 0:H]                          # [1, H]  folded conv2 bias
    bl1 = slab_ref[2:3, 0:16]                        # [1, 16] lin1 bias
    wl2_row = slab_ref[3:4, 0:16]                    # [1, 16] lin2 weight (as a row)
    bl2 = slab_ref[4:5, 0:1]                         # [1, 1]  lin2 bias

    # ---- GraphConv 1 (BN folded into w1/b1; rel+root merged into one matmul) ----
    agg = jnp.dot(a, x, preferred_element_type=f32)                      # [N, F]
    cat1 = jnp.concatenate([agg, x], axis=1)                             # [N, 2F]
    h = jnp.maximum(jnp.dot(cat1, w1_ref[...],
                            preferred_element_type=f32) + b1, 0.0)       # [N, H]

    # ---- GraphConv 2 ----
    agg2 = jnp.dot(a, h, preferred_element_type=f32)                     # [N, H]
    cat2 = jnp.concatenate([agg2, h], axis=1)                            # [N, 2H]
    h2 = jnp.maximum(jnp.dot(cat2, w2_ref[...],
                             preferred_element_type=f32) + b2, 0.0)      # [N, H]

    # ---- global_max_pool: one vectorized masked max ----
    # mb is [G, N, 1] with 0 where node n belongs to graph g, -1e30 otherwise.
    # (If a graph had zero nodes its row would saturate at ~-1e30, same as before.)
    sel = h2[None, :, :] + mb_ref[...]                                   # [G, N, H]
    pooled = jnp.max(sel, axis=1)                                        # [G, H]

    # ---- dropout: identity in eval ----  lin1 -> relu -> lin2 -> sigmoid
    z = jnp.maximum(jnp.dot(pooled, wl1_ref[...],
                            preferred_element_type=f32) + bl1, 0.0)      # [G, 16]
    y = jnp.sum(z * wl2_row, axis=1, keepdims=True) + bl2                # [G, 1]
    y = jax.nn.sigmoid(y)

    # Lane-dense output store: broadcast across 128 lanes; wrapper slices [:, :1].
    out_ref[...] = jnp.broadcast_to(y, out_ref.shape)                    # [G, 128]


def model5_forward(x, edge_index, edge_attr, batch, params, num_graphs):
    """x: [N, F] f32, edge_index: [2, E] int32, edge_attr: [E] f32, batch: [N] int32."""
    n_nodes = x.shape[0]
    h_dim = params["w1_rel"].shape[1]
    assert h_dim <= 128 and num_graphs >= 1

    src, dst = edge_index[0], edge_index[1]
    # Dense weighted adjacency: messages flow source -> target, 'add' aggregation
    # (duplicate edges accumulate, matching PyG GraphConv with edge_weight).
    a = jnp.zeros((n_nodes, n_nodes), jnp.float32).at[dst, src].add(edge_attr)

    # Fold eval-mode BatchNorm into the conv weights/biases and merge rel/root.
    w1 = jnp.concatenate([params["w1_rel"], params["w1_root"]], axis=0) * params["bn1_scale"]
    b1 = params["b1_rel"] * params["bn1_scale"] + params["bn1_shift"]
    w2 = jnp.concatenate([params["w2_rel"], params["w2_root"]], axis=0) * params["bn2_scale"]
    b2 = params["b2_rel"] * params["bn2_scale"] + params["bn2_shift"]

    # Pack every tiny parameter into a single lane-aligned (8,128) slab -> one DMA.
    slab = jnp.zeros((8, 128), jnp.float32)
    slab = slab.at[0, :h_dim].set(b1[0])
    slab = slab.at[1, :h_dim].set(b2[0])
    slab = slab.at[2, :16].set(params["b_lin1"][0])
    slab = slab.at[3, :16].set(params["w_lin2"][:, 0])
    slab = slab.at[4, 0].set(params["b_lin2"][0, 0])

    # Additive pooling mask: 0 where node belongs to graph g, -1e30 elsewhere. [G, N, 1]
    mb = jnp.where(batch[None, :] == jnp.arange(num_graphs, dtype=batch.dtype)[:, None],
                   0.0, -1e30).astype(jnp.float32)[:, :, None]

    operands = (a, x.astype(jnp.float32), w1, w2, params["w_lin1"], slab, mb)
    vmem = pl.BlockSpec(memory_space=pltpu.MemorySpace.VMEM)

    out = pl.pallas_call(
        functools.partial(_gcnn_kernel, h_dim),
        out_shape=jax.ShapeDtypeStruct((num_graphs, 128), jnp.float32),
        in_specs=[vmem] * len(operands),
        out_specs=vmem,
    )(*operands)
    return out[:, :1]                                                    # [G, 1]


def init_params(key, features_channels, hidden_channels):
    ks = jax.random.split(key, 16)
    f, h = features_channels, hidden_channels
    eps = 1e-5

    def lin(k, d_in, d_out):
        bound = 1.0 / jnp.sqrt(d_in)
        return jax.random.uniform(k, (d_in, d_out), jnp.float32, -bound, bound)

    def bn(kg, kb, km, kv, dim):
        gamma = jax.random.uniform(kg, (1, dim), jnp.float32, 0.5, 1.5)
        beta = jax.random.uniform(kb, (1, dim), jnp.float32, -0.1, 0.1)
        mean = jax.random.uniform(km, (1, dim), jnp.float32, -0.1, 0.1)
        var = jax.random.uniform(kv, (1, dim), jnp.float32, 0.5, 1.5)
        scale = gamma / jnp.sqrt(var + eps)
        shift = beta - mean * scale
        return scale, shift

    bn1_scale, bn1_shift = bn(ks[6], ks[7], ks[8], ks[9], h)
    bn2_scale, bn2_shift = bn(ks[10], ks[11], ks[12], ks[13], h)

    return {
        # GraphConv1: lin_rel (with bias), lin_root (no bias)
        "w1_rel": lin(ks[0], f, h), "b1_rel": jnp.zeros((1, h), jnp.float32) + 0.01,
        "w1_root": lin(ks[1], f, h),
        # GraphConv2
        "w2_rel": lin(ks[2], h, h), "b2_rel": jnp.zeros((1, h), jnp.float32) + 0.01,
        "w2_root": lin(ks[3], h, h),
        # folded BatchNorm params (eval mode)
        "bn1_scale": bn1_scale, "bn1_shift": bn1_shift,
        "bn2_scale": bn2_scale, "bn2_shift": bn2_shift,
        # readout MLP
        "w_lin1": lin(ks[4], h, 16), "b_lin1": jnp.zeros((1, 16), jnp.float32) + 0.01,
        "w_lin2": lin(ks[5], 16, 1), "b_lin2": jnp.zeros((1, 1), jnp.float32) + 0.01,
    }


if __name__ == "__main__":
    key = jax.random.PRNGKey(0)
    k_param, k_x, k_src, k_dst, k_w = jax.random.split(key, 5)

    features_channels = 4
    hidden_channels = 32
    num_nodes = 16
    num_edges = 40
    num_graphs = 2

    params = init_params(k_param, features_channels, hidden_channels)

    x = jax.random.normal(k_x, (num_nodes, features_channels), jnp.float32)
    src = jax.random.randint(k_src, (num_edges,), 0, num_nodes, jnp.int32)
    dst = jax.random.randint(k_dst, (num_edges,), 0, num_nodes, jnp.int32)
    edge_index = jnp.stack([src, dst], axis=0)                       # [2, E]
    edge_attr = jax.random.uniform(k_w, (num_edges,), jnp.float32)   # scalar edge weights
    batch = jnp.concatenate([jnp.zeros((num_nodes // 2,), jnp.int32),
                             jnp.ones((num_nodes - num_nodes // 2,), jnp.int32)])

    out = model5_forward(x, edge_index, edge_attr, batch, params, num_graphs)
    out = jax.block_until_ready(out)
    assert out.shape == (num_graphs, 1)
    assert bool(jnp.all(jnp.isfinite(out)))
    assert bool(jnp.all((out >= 0.0) & (out <= 1.0)))
    print("KERNEL_OK")
</pallas_src>

<mosaic_0001>
module attributes {stable_mosaic.version = 11 : i64} {
  func.func @_gcnn_kernel(%arg0: memref<16x16xf32, #tpu.memory_space<vmem>>, %arg1: memref<16x4xf32, #tpu.memory_space<vmem>>, %arg2: memref<8x32xf32, #tpu.memory_space<vmem>>, %arg3: memref<64x32xf32, #tpu.memory_space<vmem>>, %arg4: memref<32x16xf32, #tpu.memory_space<vmem>>, %arg5: memref<8x128xf32, #tpu.memory_space<vmem>>, %arg6: memref<2x16x1xf32, #tpu.memory_space<vmem>>, %arg7: memref<2x128xf32, #tpu.memory_space<vmem>>) attributes {dimension_semantics = [], scalar_prefetch = 0 : i64, scratch_operands = 0 : i64, tpu.core_type = #tpu.core_type<tc>} {
    %c0 = arith.constant 0 : index
    %c0_0 = arith.constant 0 : index
    %0 = vector.load %arg0[%c0, %c0_0] : memref<16x16xf32, #tpu.memory_space<vmem>>, vector<16x16xf32>
    %c0_1 = arith.constant 0 : index
    %c0_2 = arith.constant 0 : index
    %1 = vector.load %arg1[%c0_1, %c0_2] : memref<16x4xf32, #tpu.memory_space<vmem>>, vector<16x4xf32>
    %c0_3 = arith.constant 0 : index
    %c0_4 = arith.constant 0 : index
    %2 = vector.load %arg5[%c0_3, %c0_4] : memref<8x128xf32, #tpu.memory_space<vmem>>, vector<1x32xf32>
    %c1 = arith.constant 1 : index
    %c0_5 = arith.constant 0 : index
    %3 = vector.load %arg5[%c1, %c0_5] : memref<8x128xf32, #tpu.memory_space<vmem>>, vector<1x32xf32>
    %c2 = arith.constant 2 : index
    %c0_6 = arith.constant 0 : index
    %4 = vector.load %arg5[%c2, %c0_6] : memref<8x128xf32, #tpu.memory_space<vmem>>, vector<1x16xf32>
    %c3 = arith.constant 3 : index
    %c0_7 = arith.constant 0 : index
    %5 = vector.load %arg5[%c3, %c0_7] : memref<8x128xf32, #tpu.memory_space<vmem>>, vector<1x16xf32>
    %c4 = arith.constant 4 : index
    %c0_8 = arith.constant 0 : index
    %6 = vector.load %arg5[%c4, %c0_8] : memref<8x128xf32, #tpu.memory_space<vmem>>, vector<1x1xf32>
    %cst = arith.constant dense<0.000000e+00> : vector<16x4xf32>
    %7 = tpu.matmul %0, %1, %cst {dimension_numbers = #tpu.dot_dimension_numbers<[1], [0], [0], [1], [0, 0, 1, 1], [], []>} : vector<16x16xf32>, vector<16x4xf32>, vector<16x4xf32> -> vector<16x4xf32>
    %8 = tpu.concatenate %7, %1 in 1 : vector<16x4xf32>, vector<16x4xf32> -> vector<16x8xf32>
    %c0_9 = arith.constant 0 : index
    %c0_10 = arith.constant 0 : index
    %9 = vector.load %arg2[%c0_9, %c0_10] : memref<8x32xf32, #tpu.memory_space<vmem>>, vector<8x32xf32>
    %cst_11 = arith.constant dense<0.000000e+00> : vector<16x32xf32>
    %10 = tpu.matmul %8, %9, %cst_11 {dimension_numbers = #tpu.dot_dimension_numbers<[1], [0], [0], [1], [0, 0, 1, 1], [], []>} : vector<16x8xf32>, vector<8x32xf32>, vector<16x32xf32> -> vector<16x32xf32>
    %11 = vector.broadcast %2 : vector<1x32xf32> to vector<16x32xf32>
    %12 = arith.addf %10, %11 : vector<16x32xf32>
    %cst_12 = arith.constant 0.000000e+00 : f32
    %13 = vector.broadcast %cst_12 : f32 to vector<16x32xf32>
    %14 = arith.maximumf %12, %13 : vector<16x32xf32>
    %cst_13 = arith.constant dense<0.000000e+00> : vector<16x32xf32>
    %15 = tpu.matmul %0, %14, %cst_13 {dimension_numbers = #tpu.dot_dimension_numbers<[1], [0], [0], [1], [0, 0, 1, 1], [], []>} : vector<16x16xf32>, vector<16x32xf32>, vector<16x32xf32> -> vector<16x32xf32>
    %16 = tpu.concatenate %15, %14 in 1 : vector<16x32xf32>, vector<16x32xf32> -> vector<16x64xf32>
    %c0_14 = arith.constant 0 : index
    %c0_15 = arith.constant 0 : index
    %17 = vector.load %arg3[%c0_14, %c0_15] : memref<64x32xf32, #tpu.memory_space<vmem>>, vector<64x32xf32>
    %cst_16 = arith.constant dense<0.000000e+00> : vector<16x32xf32>
    %18 = tpu.matmul %16, %17, %cst_16 {dimension_numbers = #tpu.dot_dimension_numbers<[1], [0], [0], [1], [0, 0, 1, 1], [], []>} : vector<16x64xf32>, vector<64x32xf32>, vector<16x32xf32> -> vector<16x32xf32>
    %19 = vector.broadcast %3 : vector<1x32xf32> to vector<16x32xf32>
    %20 = arith.addf %18, %19 : vector<16x32xf32>
    %cst_17 = arith.constant 0.000000e+00 : f32
    %21 = vector.broadcast %cst_17 : f32 to vector<16x32xf32>
    %22 = arith.maximumf %20, %21 : vector<16x32xf32>
    %23 = vector.shape_cast %22 : vector<16x32xf32> to vector<1x16x32xf32>
    %c0_18 = arith.constant 0 : index
    %c0_19 = arith.constant 0 : index
    %c0_20 = arith.constant 0 : index
    %24 = vector.load %arg6[%c0_18, %c0_19, %c0_20] : memref<2x16x1xf32, #tpu.memory_space<vmem>>, vector<2x16x1xf32>
    %25 = vector.broadcast %23 : vector<1x16x32xf32> to vector<2x16x32xf32>
    %26 = vector.broadcast %24 : vector<2x16x1xf32> to vector<2x16x32xf32>
    %27 = arith.addf %25, %26 : vector<2x16x32xf32>
    %cst_21 = arith.constant dense<0xFF800000> : vector<2x32xf32>
    %28 = vector.multi_reduction <maximumf>, %27, %cst_21 [1] : vector<2x16x32xf32> to vector<2x32xf32>
    %c0_22 = arith.constant 0 : index
    %c0_23 = arith.constant 0 : index
    %29 = vector.load %arg4[%c0_22, %c0_23] : memref<32x16xf32, #tpu.memory_space<vmem>>, vector<32x16xf32>
    %cst_24 = arith.constant dense<0.000000e+00> : vector<2x16xf32>
    %30 = tpu.matmul %28, %29, %cst_24 {dimension_numbers = #tpu.dot_dimension_numbers<[1], [0], [0], [1], [0, 0, 1, 1], [], []>} : vector<2x32xf32>, vector<32x16xf32>, vector<2x16xf32> -> vector<2x16xf32>
    %31 = vector.broadcast %4 : vector<1x16xf32> to vector<2x16xf32>
    %32 = arith.addf %30, %31 : vector<2x16xf32>
    %cst_25 = arith.constant 0.000000e+00 : f32
    %33 = vector.broadcast %cst_25 : f32 to vector<2x16xf32>
    %34 = arith.maximumf %32, %33 : vector<2x16xf32>
    %35 = vector.broadcast %5 : vector<1x16xf32> to vector<2x16xf32>
    %36 = arith.mulf %34, %35 : vector<2x16xf32>
    %cst_26 = arith.constant dense<0.000000e+00> : vector<2xf32>
    %37 = vector.multi_reduction <add>, %36, %cst_26 [1] : vector<2x16xf32> to vector<2xf32>
    %38 = vector.shape_cast %37 : vector<2xf32> to vector<2x1xf32>
    %39 = vector.broadcast %6 : vector<1x1xf32> to vector<2x1xf32>
    %40 = arith.addf %38, %39 : vector<2x1xf32>
    %41 = arith.negf %40 : vector<2x1xf32>
    %42 = math.exp %41 : vector<2x1xf32>
    %cst_27 = arith.constant 1.000000e+00 : f32
    %43 = vector.broadcast %cst_27 : f32 to vector<2x1xf32>
    %44 = arith.addf %43, %42 : vector<2x1xf32>
    %45 = arith.divf %43, %44 : vector<2x1xf32>
    %46 = vector.shape_cast %45 : vector<2x1xf32> to vector<2x1xf32>
    %47 = vector.broadcast %46 : vector<2x1xf32> to vector<2x128xf32>
    %c0_28 = arith.constant 0 : index
    %c0_29 = arith.constant 0 : index
    %48 = vector.load %arg7[%c0_28, %c0_29] : memref<2x128xf32, #tpu.memory_space<vmem>>, vector<2x128xf32>
    tpu.vector_store %arg7[%c0_28, %c0_29], %47 {strides = array<i32>} : memref<2x128xf32, #tpu.memory_space<vmem>>, vector<2x128xf32>,
    return
  }
}

</mosaic_0001>

<bundles_post_ra>
// kernel: tpu_custom_call.1
= control target key start
LH: loop header
LB: loop body
LE: loop exit
PB: predicated region body
PF: predicated region fallthrough
CT: control target
= control target key end

     0   :  { %vm36_vm0 = vcmask 130048   ;;  %s728_s30 = smov 4   ;;  %s876_s0 = inlined_call_operand.vmem [shape: f32[16,16], index: 0, kind: input, shape index: {}]   ;;  %s877_s1 = inlined_call_operand.vmem [shape: f32[16,4], index: 1, kind: input, shape index: {}]   ;;  %s878_s2 = inlined_call_operand.vmem [shape: f32[8,32], index: 2, kind: input, shape index: {}]   ;;  %s879_s3 = inlined_call_operand.vmem [shape: f32[64,32], index: 3, kind: input, shape index: {}]   ;;  %s880_s4 = inlined_call_operand.vmem [shape: f32[32,16], index: 4, kind: input, shape index: {}]   ;;  %s881_s5 = inlined_call_operand.vmem [shape: f32[8,128], index: 5, kind: input, shape index: {}]   ;;  %s882_s6 = inlined_call_operand.vmem [shape: f32[2,16,1], index: 6, kind: input, shape index: {}]   ;;  %s883_s7 = inlined_call_operand.hbm [shape: f32[2,128], index: 7, kind: output, shape index: {}]  }
   0x1   :  { %v29_v0 = vld [vmem:[%s877_s1] sm:$0xff]  ;;  %v30_v1 = vld [vmem:[%s877_s1 + $0x8] sm:$0xff] }
   0x2   :  { %v27_v2 = vld [vmem:[%s876_s0] sm:$0xff]  ;;  %v661_v3 = vpack.c.bf16 %v30_v1, %v29_v0  ;;  %120 = vrot.lane.b32.xlu0 %v29_v0, %s728_s30 }
   0x3   :  { %616 = vmatprep.mubr.msk.f32.mxu0 %vm36_vm0, %v27_v2 }
   0x4   :  { %12 = vsyncpa [#allocation3], 0  ;;  %662 = vmatprep.subr.bf16.mxu0 %v661_v3  ;;  %v28_v4 = vld [vmem:[%s876_s0 + $0x8] sm:$0xff]  ;;  %v129_v5 = vld [vmem:[%s878_s2] sm:$0xff]  ;;  %vm126_vm1 = vcmask 31744   ;;  %vm134_vm2 = vcmask 64512  }
   0x5   :  { %664 = vmatpush3.bf16.msra.mxu0 %v661_v3  ;;  %619 = vmatprep.subr.mxu1 %v129_v5  ;;  %v304_v12 = vld [vmem:[%s879_s3] sm:$0xff]  ;;  %v305_v13 = vld [vmem:[%s879_s3 + $0x8] sm:$0xff]  ;;  %v306_v14 = vld [vmem:[%s879_s3 + $0x10] sm:$0xff]  ;;  %s729_s23 = smov 32   ;;  %v730_v34 = vmov 0   ;;  %vm301_vm3 = vcmask 261120  }
   0x6   :  { %122 = vrot.lane.b32.xlu0 %v30_v1, %s728_s30  ;;  %620 = vmatpush3.msra.mxu1 %v129_v5  ;;  %v669_v15 = vpack.c.bf16 %v305_v13, %v304_v12  ;;  %v307_v16 = vld [vmem:[%s879_s3 + $0x18] sm:$0xff]  ;;  %v573_v17 = vld [vmem:[%s881_s5] ss:$0 sm:$0xff]  ;;  %v309_v20 = vld [vmem:[%s879_s3 + $0x28] sm:$0xff]  ;;  %vm316_vm4 = vcmask 523264   ;;  %v731_v46 = vmov 0.0|0.0  }
   0x7   :  { %v673_v18 = vpack.c.bf16 %v307_v16, %v306_v14  ;;  %v308_v19 = vld [vmem:[%s879_s3 + $0x20] sm:$0xff]  ;;  %v310_v29 = vld [vmem:[%s879_s3 + $0x30] sm:$0xff]  ;;  %v311_v30 = vld [vmem:[%s879_s3 + $0x38] sm:$0xff]  ;;  %699 = vset.pattern.permute.xlu1 %v730_v34  ;;  %698 = vset.pattern.permute.xlu0 %v730_v34  ;;  %vm732_vm5 = vmmov 0   ;;  %v733_v50 = vmov 0.0   ;;  %vm456_vm6 = vcmask 1041409  }
   0x8   :  { %617 = vmatmul.mubr.msk.f32.vlgmr.msra.gmra.mrb[0].mxu0 %vm36_vm0, %v28_v4  ;;  %670 = vmatprep.subr.bf16.mxu0 %v669_v15  ;;  %v677_v24 = vpack.c.bf16 %v309_v20, %v308_v19  ;;  %v681_v31 = vpack.c.bf16 %v311_v30, %v310_v29  ;;  %v400_v32 = vld [vmem:[%s882_s6] sm:$0xff]  ;;  %v401_v33 = vld [vmem:[%s882_s6 + $0x8] sm:$0xff]  ;;  %v403_v35 = vld [vmem:[%s882_s6 + $0x18] sm:$0xff]  ;;  %vm536_vm7 = vcmask 123904  }
   0x9   :  { %672 = vmatpush3.bf16.msra.mxu0 %v669_v15  ;;  %v402_v36 = vld [vmem:[%s882_s6 + $0x10] sm:$0xff]  ;;  %v446_v43 = vld [vmem:[%s880_s4] sm:$0xff]  ;;  %v447_v44 = vld [vmem:[%s880_s4 + $0x8] sm:$0xff] }
   0xa   :  { %674 = vmatprep.subr.bf16.mxu0 %v673_v18  ;;  %406 = vperm.xlu0 %698, %v400_v32   ;;  %v686_v45 = vpack.c.bf16 %v447_v44, %v446_v43  ;;  %v448_v47 = vld [vmem:[%s880_s4 + $0x10] sm:$0xff]  ;;  %v449_v48 = vld [vmem:[%s880_s4 + $0x18] sm:$0xff]  ;;  %v578_v52 = vld [vmem:[%s881_s5 + $0x1] ss:$0 sm:$0xff] }
   0xb   :  { %v689_v49 = vpack.c.bf16 %v449_v48, %v448_v47  ;;  %v584_v29 = vld [vmem:[%s881_s5 + $0x4] ss:$0 sm:$0xff] }
   0xd   :  { %676 = vmatpush3.bf16.msra.mxu0 %v673_v18 }
   0xe   :  { %678 = vmatprep.subr.bf16.mxu0 %v677_v24  ;;  %421 = vperm.xlu0 %698, %v403_v35  }
  0x11   :  { %680 = vmatpush3.bf16.msra.mxu0 %v677_v24 }
  0x12   :  { %682 = vmatprep.subr.bf16.mxu0 %v681_v31 }
  0x15   :  { %684 = vmatpush3.bf16.msra.mxu0 %v681_v31 }
  0x74   :  { %v121_v6 = vpop.permute.xlu0 %120 }
  0x78   :  { %v123_v7 = vpop.permute.xlu0 %122 }
  0x89   :  { %v407_v51 = vpop.permute.xlu0 %406 }
  0x8d   :  { %v422_v60 = vpop.permute.xlu0 %421 }
  0xdb   :  { %v618_v8 = vpop.f32.mrb[0].mxu0 }
  0xdc   :  { %v109_v9 = vpop.f32.mrb[1].mxu0  ;;  %v128_v11 = vsel %vm126_vm1, %v618_v8, %v123_v7 }
  0xdd   :  { %v127_v10 = vsel %vm126_vm1, %v109_v9, %v121_v6 }
  0xde   :  { %621 = vmatprep.mubr.msk.f32.mxu1 %vm134_vm2, %v127_v10 }
  0xdf   :  { %622 = vmatmul.mubr.msk.f32.vlgmr.msra.gmra.mrb[0].mxu1 %vm134_vm2, %v128_v11 }
  0xe0   :  { %628 = vmatprep.mubr.msk.f32.mxu1 %vm36_vm0, %v27_v2 }
 0x1b2   :  { %v623_v21 = vpop.f32.mrb[0].mxu1 }
 0x1b3   :  { %v213_v22 = vadd.f32 %v623_v21, %v573_v17  ;;  %v207_v23 = vpop.f32.mrb[1].mxu1  ;;  %v581_v21 = vld [vmem:[%s881_s5 + $0x2] ss:$0 sm:$0xff] }
 0x1b4   :  { %v208_v25 = vadd.f32 %v573_v17, %v207_v23 }
 0x1b5   :  { %v217_v26 = vmax.f32 %v213_v22, 0.0 }
 0x1b6   :  { %v216_v27 = vmax.f32 %v208_v25, 0.0  ;;  %v583_v25 = vld [vmem:[%s881_s5 + $0x3] ss:$0 sm:$0xff] }
 0x1b8   :  { %v665_v28 = vpack.c.bf16 %v217_v26, %v216_v27  ;;  %295 = vrot.lane.b32.xlu1 %v216_v27, %s729_s23 }
 0x1ba   :  { %666 = vmatprep.subr.bf16.mxu1 %v665_v28 }
 0x1bb   :  { %668 = vmatpush3.bf16.msra.mxu1 %v665_v28 }
 0x1bc   :  { %297 = vrot.lane.b32.xlu1 %v217_v26, %s729_s23  ;;  %685 = vmatprep.subr.bf16.mxu1 %v731_v46  ;;  %s734_s23 = smov [#allocation2]  }
 0x1bd   :  { %s563_s24 = sshll.u32 %s734_s23, 4  ;;  %s564_s24 = int_to_ptr.vmem [resolvable:$true] %s563_s24 }
 0x1be   :  { %629 = vmatmul.mubr.msk.f32.vlgmr.msra.gmra.mrb[2].mxu1 %vm36_vm0, %v28_v4  ;;  %s704_s25 = scalar_lea.vmem %s564_s24, 32  ;;  %p709_p1 = scmp.lt.s32.totalorder %s564_s24, %s564_s24 }
 0x1bf   :  { %687 = vmatpush3.bf16.msra.mxu1 %v686_v45  ;;  %658 = vmatprep.mubr.msk.f32.mxu1 %vm732_vm5, %v733_v50  ;;  %p705_p0 = scmp.ne.s32.totalorder %s564_s24, %s704_s25  ;;  %p710_p2 = scmp.lt.s32.totalorder %s704_s25, %s704_s25 }
 0x1c0   :  { %411 = vperm.xlu1 %699, %v401_v33   ;;  %688 = vmatprep.subr.bf16.mxu1 %v731_v46 }
 0x1c1   :  { %p711_p3 = por %p710_p2, %p709_p1 }
 0x1c3   :  { %690 = vmatpush3.bf16.msra.mxu1 %v689_v49  ;;  %p712_p4 = pnand %p711_p3, %p705_p0 }
 0x1c4   :  { %416 = vperm.xlu1 %699, %v402_v36  }
 0x22a   :  { %v296_v37 = vpop.permute.xlu1 %295 }
 0x22e   :  { %v298_v40 = vpop.permute.xlu1 %297 }
 0x23f   :  { %v412_v53 = vpop.permute.xlu1 %411 }
 0x243   :  { %v417_v63 = vpop.permute.xlu1 %416 }
 0x291   :  { %v630_v38 = vpop.f32.mrb[2].mxu1 }
 0x292   :  { %v284_v39 = vpop.f32.mrb[3].mxu1  ;;  %v303_v42 = vsel %vm301_vm3, %v630_v38, %v298_v40 }
 0x293   :  { %v302_v41 = vsel %vm301_vm3, %v284_v39, %v296_v37 }
 0x294   :  { %647 = vmatprep.mubr.msk.f32.mxu0 %vm316_vm4, %v302_v41 }
 0x295   :  { %648 = vmatmul.mubr.msk.f32.vlgmr.msra.gmra.mrb[2].mxu0 %vm316_vm4, %v303_v42 }
 0x368   :  { %v649_v54 = vpop.f32.mrb[2].mxu0 }
 0x369   :  { %v395_v55 = vadd.f32 %v649_v54, %v578_v52  ;;  %v389_v56 = vpop.f32.mrb[3].mxu0 }
 0x36a   :  { %v390_v57 = vadd.f32 %v578_v52, %v389_v56 }
 0x36b   :  { %v399_v58 = vmax.f32 %v395_v55, 0.0 }
 0x36c   :  { %v398_v59 = vmax.f32 %v390_v57, 0.0 }
 0x36d   :  { %v425_v61 = vadd.f32 %v412_v53, %v399_v58  ;;  %v427_v62 = vadd.f32 %v422_v60, %v399_v58 }
 0x36e   :  { %v424_v0 = vadd.f32 %v407_v51, %v398_v59  ;;  %v426_v1 = vadd.f32 %v417_v63, %v398_v59 }
 0x36f   :  { %v429_v2 = vsel %vm301_vm3, %v425_v61, -inf  ;;  %v438_v3 = vsel %vm301_vm3, %v427_v62, -inf }
 0x370   :  { %v428_v4 = vsel %vm301_vm3, %v424_v0, -inf  ;;  %v437_v5 = vsel %vm301_vm3, %v426_v1, -inf }
 0x371   :  { %v430_v6 = vmax.f32 %v428_v4, %v429_v2  ;;  %v439_v7 = vmax.f32 %v437_v5, %v438_v3 }
 0x373   :  { %v431_v8 = vrot.slane %v430_v6, 4  ;;  %v440_v9 = vrot.slane %v439_v7, 4 }
 0x375   :  { %v432_v10 = vmax.f32 %v430_v6, %v431_v8  ;;  %v441_v11 = vmax.f32 %v439_v7, %v440_v9 }
 0x377   :  { %v433_v12 = vrot.slane %v432_v10, 2  ;;  %v442_v13 = vrot.slane %v441_v11, 2 }
 0x379   :  { %v434_v14 = vmax.f32 %v432_v10, %v433_v12  ;;  %v443_v15 = vmax.f32 %v441_v11, %v442_v13 }
 0x37b   :  { %v435_v16 = vrot.slane %v434_v14, 1  ;;  %v444_v17 = vrot.slane %v443_v15, 1 }
 0x37d   :  { %v445_v18 = vmax.f32 %v443_v15, %v444_v17  ;;  %v436_v19 = vmax.f32 %v434_v14, %v435_v16 }
 0x37f   :  { %v457_v20 = vsel %vm456_vm6, %v445_v18, %v436_v19 }
 0x380   :  { %659 = vmatmul.mubr.msk.f32.vlgmr.msra.gmra.mrb[4].mxu1 %vm301_vm3, %v457_v20 }
 0x453   :  { %v526_v22 = vpop.f32.mrb[4].mxu1 }
 0x454   :  { %v527_v23 = vadd.f32 %v581_v21, %v526_v22  ;;  %v660_v24 = vpop.f32.mrb[5].mxu1 }
 0x456   :  { %v530_v26 = vmax.f32 %v527_v23, 0.0 }
 0x458   :  { %v535_v27 = vmul.f32 %v583_v25, %v530_v26 }
 0x45a   :  { %v537_v28 = vsel %vm536_vm7, %v535_v27, 0.0 }
 0x45b   :  { %538 = vadd.xlane.f32.xlu1 %v537_v28 }
 0x4e8   :  { %v539_v30 = vpop.xlane.xlu1 %538 }
 0x4e9   :  { %v544_v31 = vadd.f32 %v584_v29, %v539_v30 }
 0x4eb   :  { %v585_v32 = vmul.f32 -1.442695, %v544_v31 }
 0x4ed   :  { %700 = vpow2.f32 %v585_v32 }
 0x4f7   :  { %v701_v33 = vpop.eup %700 }
 0x4f8   :  { %v548_v34 = vadd.f32 1.0, %v701_v33 }
 0x4fa   :  { %702 = vrcp.f32 %v548_v34 }
 0x504   :  { %v703_v35 = vpop.eup %702 }
 0x505   :  { %553 = vperm.xlu0 %698, %v703_v35  }
 0x584   :  { %v554_v36 = vpop.permute.xlu0 %553 }
 0x585   :  { %556 = vst [vmem:[#allocation2] sm:$0x3] %v554_v36 }
 0x586   :  { %715 = shalt.err (!%p712_p4)
}
 0x587   :  { %s716_s27 = scalar_lea.hbm %s883_s7, 32 }
 0x588   :  { %p717_p5 = scmp.ne.s32.totalorder %s883_s7, %s716_s27  ;;  %p720_p6 = scmp.lt.u32.totalorder %s716_s27, %s883_s7 }
 0x58a   :  { %p722_p7 = pnand %p720_p6, %p717_p5 }
 0x58c   :  { %725 = shalt.err (!%p722_p7)
}
 0x58d   :  { %566 = dma.vmem_to_hbm [thread:$0]  %s564_s24, 32, %s883_s7, [#allocation3]  }
 0x58e   :  { %726 = dma.done.wait [#allocation3], 32  }
 0x58f   :  { %727 = vsyncadd [#allocation3], 4294967264 }
 0x590   :  { %570 = vsyncpa [#allocation3], 1 }

</bundles_post_ra>
